<compile_context>
chip_gen: v7x
topology: tpu7x:2x2x1
jax: 0.10.0
libtpu: 0.0.40
codegen_flags: <defaults>
</compile_context>

<pallas_src>
import math
import functools

import jax
import jax.numpy as jnp
from jax.experimental import pallas as pl
from jax.experimental.pallas import tpu as pltpu

EPS = 1e-12  # TF-style LayerNorm epsilon (inside the sqrt)


# ----------------------------- shared helpers ------------------------------

def _layernorm(x, gamma, beta):
    u = jnp.mean(x, axis=-1, keepdims=True)
    xc = x - u
    var = jnp.mean(xc * xc, axis=-1, keepdims=True)
    return gamma * (xc * jax.lax.rsqrt(var + EPS)) + beta


def _gelu(x):
    # Exact (erf-based) GELU, matching the HuggingFace/reference implementation.
    return x * 0.5 * (1.0 + jax.lax.erf(x / math.sqrt(2.0)))


# Row layout of the packed per-layer vector tensor (L, 8, C):
#   0: b_qkv (3D, Q part pre-scaled)   1: bf1 (F)
#   2: bo (D)   3: g1 (D)   4: b1 (D)   5: bf2 (D)   6: g2 (D)   7: b2 (D)
_N_VEC_ROWS = 8


# --------------------------- fused transformer kernel -----------------------

def _transformer_kernel(h0_ref, mask_ref, wqkv_ref, wo_ref, wf1_ref, wf2_ref,
                        vecs_ref, h_ref, *, n_heads):
    layer = pl.program_id(1)

    # Layer 0: seed the resident activation block from the (already
    # embedding-LayerNormed) input slab for this batch.
    @pl.when(layer == 0)
    def _():
        h_ref[...] = h0_ref[...]

    x = h_ref[...]                               # (S, D) f32, resident VMEM
    S, D = x.shape
    H = n_heads
    W = D // H
    F = wf1_ref.shape[1]

    vecs = vecs_ref[...]                         # (8, C) f32, one DMA per layer
    b_qkv = vecs[0:1, :3 * D]                    # (1, 3D)
    bf1 = vecs[1:2, :F]                          # (1, F)
    bo = vecs[2:3, :D]
    g1 = vecs[3:4, :D]
    b1 = vecs[4:5, :D]
    bf2 = vecs[5:6, :D]
    g2 = vecs[6:7, :D]
    b2 = vecs[7:8, :D]

    x_bf = x.astype(jnp.bfloat16)

    # ---- fused Q/K/V projection: one lane-dense (S,D)@(D,3D) MXU pass ----
    # NOTE: 1/sqrt(head_dim) is already folded into the Q columns of wqkv/b_qkv.
    qkv = jnp.dot(x_bf, wqkv_ref[...],
                  preferred_element_type=jnp.float32) + b_qkv       # (S, 3D) f32

    # Split heads with lane slices + leading-axis stack (cheap, avoids an
    # exotic lane-splitting reshape/transpose relayout).
    def split_heads(base):                       # -> (H, S, W) bf16
        return jnp.stack(
            [qkv[:, base + h * W: base + (h + 1) * W] for h in range(H)],
            axis=0).astype(jnp.bfloat16)

    q = split_heads(0)
    k = split_heads(D)
    v = split_heads(2 * D)

    # ---- scores / softmax (batched over heads, batch-local keys) ----
    s = jnp.einsum('hqw,hkw->hqk', q, k,
                   preferred_element_type=jnp.float32)               # (H,S,S) f32
    # key padding: scores -= 10000 * (1 - mask), exactly as the reference
    s = s - 10000.0 * (1.0 - mask_ref[...])[None]                    # (1,1,S) bcast
    s = s - jnp.max(s, axis=-1, keepdims=True)
    p = jnp.exp(s)
    p = p * pl.reciprocal(jnp.sum(p, axis=-1, keepdims=True), approx=True)
    # TODO(synk): attention dropout (p_drop_attn) treated as identity.

    ctx = jnp.einsum('hqk,hkw->hqw', p.astype(jnp.bfloat16), v,
                     preferred_element_type=jnp.float32)             # (H,S,W) f32

    # Merge heads (lane concat) and do ONE full-K output projection.
    ctx_m = jnp.concatenate([ctx[h] for h in range(H)], axis=-1)     # (S, D) f32
    attn = jnp.dot(ctx_m.astype(jnp.bfloat16), wo_ref[...],
                   preferred_element_type=jnp.float32) + bo          # (S, D)

    # residual + LayerNorm1 (f32)
    h1 = _layernorm(x + attn, g1, b1)

    # ---- position-wise feed-forward (two full-width matmuls) ----
    ff = jnp.dot(h1.astype(jnp.bfloat16), wf1_ref[...],
                 preferred_element_type=jnp.float32) + bf1
    ff = _gelu(ff)
    ff = jnp.dot(ff.astype(jnp.bfloat16), wf2_ref[...],
                 preferred_element_type=jnp.float32) + bf2
    # TODO(synk): hidden dropout (p_drop_hidden) treated as identity.

    # residual + LayerNorm2 -> becomes next layer's input (stays in VMEM)
    h_ref[...] = _layernorm(h1 + ff, g2, b2)


def _fused_transformer(h0, mask, sp, *, n_heads):
    B, S, D = h0.shape
    L = sp['w_qkv'].shape[0]
    F = sp['wf1'].shape[2]
    C = sp['vecs'].shape[2]

    def per_batch(shape):
        zeros = (0,) * len(shape)
        return pl.BlockSpec((None,) + shape, lambda b, l: (b,) + zeros)

    def per_layer(shape):
        # Stacked per-layer parameter: squeezed leading layer axis selected by
        # the layer grid index; double-buffering prefetches layer l+1 weights
        # while layer l computes.
        zeros = (0,) * len(shape)
        return pl.BlockSpec((None,) + shape, lambda b, l: (l,) + zeros)

    kernel = functools.partial(_transformer_kernel, n_heads=n_heads)
    return pl.pallas_call(
        kernel,
        out_shape=jax.ShapeDtypeStruct((B, S, D), jnp.float32),
        grid=(B, L),
        in_specs=[
            per_batch((S, D)),                      # h0 (post-embedding-LN)
            per_batch((1, S)),                      # key-valid mask
            per_layer((D, 3 * D)),                  # fused Wqkv (bf16, Q pre-scaled)
            per_layer((D, D)),                      # Wo (bf16)
            per_layer((D, F)),                      # Wf1 (bf16)
            per_layer((F, D)),                      # Wf2 (bf16)
            per_layer((_N_VEC_ROWS, C)),            # packed per-layer vectors (f32)
        ],
        # Output block index depends only on the (parallel) batch axis, so it
        # stays resident in VMEM across the whole (innermost) layer axis and is
        # written back to HBM once per batch block.
        out_specs=per_batch((S, D)),
        compiler_params=pltpu.CompilerParams(
            dimension_semantics=("parallel", "arbitrary")),
    )(h0, mask, sp['w_qkv'], sp['wo'], sp['wf1'], sp['wf2'], sp['vecs'])


# ----------------------------- parameter setup ------------------------------

def init_params(key, *, vocab_size, max_len, n_segments, dim, dim_ff, n_layers):
    keys = jax.random.split(key, 3 + n_layers)

    def dense(k, din, dout):
        return jax.random.normal(k, (din, dout), jnp.float32) * 0.02

    params = {
        'tok': jax.random.normal(keys[0], (vocab_size, dim), jnp.float32) * 0.02,
        'pos': jax.random.normal(keys[1], (max_len, dim), jnp.float32) * 0.02,
        'seg': jax.random.normal(keys[2], (n_segments, dim), jnp.float32) * 0.02,
        'g_e': jnp.ones((1, dim), jnp.float32),
        'b_e': jnp.zeros((1, dim), jnp.float32),
        'blocks': [],
    }
    for i in range(n_layers):
        ks = jax.random.split(keys[3 + i], 6)
        params['blocks'].append({
            'wq': dense(ks[0], dim, dim), 'bq': jnp.zeros((1, dim), jnp.float32),
            'wk': dense(ks[1], dim, dim), 'bk': jnp.zeros((1, dim), jnp.float32),
            'wv': dense(ks[2], dim, dim), 'bv': jnp.zeros((1, dim), jnp.float32),
            'wo': dense(ks[3], dim, dim), 'bo': jnp.zeros((1, dim), jnp.float32),
            'g1': jnp.ones((1, dim), jnp.float32), 'b1': jnp.zeros((1, dim), jnp.float32),
            'wf1': dense(ks[4], dim, dim_ff), 'bf1': jnp.zeros((1, dim_ff), jnp.float32),
            'wf2': dense(ks[5], dim_ff, dim), 'bf2': jnp.zeros((1, dim), jnp.float32),
            'g2': jnp.ones((1, dim), jnp.float32), 'b2': jnp.zeros((1, dim), jnp.float32),
        })
    return params


def _stack_block_params(blocks, n_heads):
    """Stack per-layer weights on a leading L axis, fuse Q/K/V into one lane-
    dense (D, 3D) weight with 1/sqrt(head_dim) folded into the Q columns, cast
    matmul operands to bf16, and pack all tiny per-layer vectors into a single
    (L, 8, C) tensor so each layer streams one vector DMA instead of ten."""
    L = len(blocks)
    D = blocks[0]['wq'].shape[0]
    F = blocks[0]['wf1'].shape[1]
    W = D // n_heads
    scale = 1.0 / math.sqrt(W)

    def stack(name):
        return jnp.stack([blk[name] for blk in blocks], axis=0)

    w_qkv = jnp.concatenate(
        [stack('wq') * scale, stack('wk'), stack('wv')], axis=2)      # (L, D, 3D)
    b_qkv = jnp.concatenate(
        [stack('bq').reshape(L, D) * scale,
         stack('bk').reshape(L, D),
         stack('bv').reshape(L, D)], axis=1)                          # (L, 3D)

    C = max(3 * D, F)

    def pad(v):                                                       # (L,n)->(L,C)
        return jnp.pad(v, ((0, 0), (0, C - v.shape[1])))

    vecs = jnp.stack([
        pad(b_qkv),
        pad(stack('bf1').reshape(L, F)),
        pad(stack('bo').reshape(L, D)),
        pad(stack('g1').reshape(L, D)),
        pad(stack('b1').reshape(L, D)),
        pad(stack('bf2').reshape(L, D)),
        pad(stack('g2').reshape(L, D)),
        pad(stack('b2').reshape(L, D)),
    ], axis=1)                                                        # (L, 8, C)

    return {
        'w_qkv': w_qkv.astype(jnp.bfloat16),
        'wo': stack('wo').astype(jnp.bfloat16),
        'wf1': stack('wf1').astype(jnp.bfloat16),
        'wf2': stack('wf2').astype(jnp.bfloat16),
        'vecs': vecs.astype(jnp.float32),
    }


# ------------------------------ full forward --------------------------------

def transformer_forward(params, x_ids, seg_ids, mask, *, n_heads):
    B, S = x_ids.shape
    D = params['tok'].shape[1]
    assert D % n_heads == 0

    # Embedding gathers + embedding LayerNorm are glue (plain JAX): keeps the
    # raw embedding slab out of the kernel's resident VMEM footprint.
    pos = jnp.arange(S, dtype=jnp.int32)[None, :]
    e = (params['tok'][x_ids]
         + params['pos'][pos]
         + params['seg'][seg_ids]).astype(jnp.float32)                # (B, S, D)
    h0 = _layernorm(e, params['g_e'], params['b_e'])                  # (B, S, D)
    # TODO(synk): embedding dropout (p_drop_hidden) treated as identity.

    mask_f = mask.astype(jnp.float32).reshape(B, 1, S)                # key-valid

    stacked = _stack_block_params(params['blocks'], n_heads)
    h = _fused_transformer(h0, mask_f, stacked, n_heads=n_heads)
    return h                                                          # (B, S, D)


# ---------------------------------- main -------------------------------------

if __name__ == "__main__":
    # cfg: dim=32, n_heads=4, dim_ff=64, n_layers=2, vocab=50, max_len=16, n_segments=2
    B, S, D = 2, 8, 32
    N_HEADS, DIM_FF, N_LAYERS = 4, 64, 2
    VOCAB, MAX_LEN, N_SEG = 50, 16, 2

    key = jax.random.PRNGKey(0)
    kp, kx, ks = jax.random.split(key, 3)

    params = init_params(kp, vocab_size=VOCAB, max_len=MAX_LEN,
                         n_segments=N_SEG, dim=D, dim_ff=DIM_FF,
                         n_layers=N_LAYERS)

    x_ids = jax.random.randint(kx, (B, S), 0, VOCAB, dtype=jnp.int32)
    seg_ids = jax.random.randint(ks, (B, S), 0, N_SEG, dtype=jnp.int32)
    # attention mask: first sequence fully valid, second has 2 padded positions
    lens = jnp.array([[S], [S - 2]], dtype=jnp.int32)
    mask = (jnp.arange(S, dtype=jnp.int32)[None, :] < lens).astype(jnp.float32)

    out = transformer_forward(params, x_ids, seg_ids, mask, n_heads=N_HEADS)
    out = jax.block_until_ready(out)
    assert out.shape == (B, S, D)
    print("KERNEL_OK")
</pallas_src>

<mosaic_0001>
module attributes {stable_mosaic.version = 11 : i64} {
  func.func @_transformer_kernel(%arg0: i32, %arg1: i32, %arg2: memref<1x8x32xf32, #tpu.memory_space<vmem>>, %arg3: memref<1x1x8xf32, #tpu.memory_space<vmem>>, %arg4: memref<1x32x96xbf16, #tpu.memory_space<vmem>>, %arg5: memref<1x32x32xbf16, #tpu.memory_space<vmem>>, %arg6: memref<1x32x64xbf16, #tpu.memory_space<vmem>>, %arg7: memref<1x64x32xbf16, #tpu.memory_space<vmem>>, %arg8: memref<1x8x96xf32, #tpu.memory_space<vmem>>, %arg9: memref<1x8x32xf32, #tpu.memory_space<vmem>>) attributes {dimension_semantics = [#tpu.dimension_semantics<parallel>, #tpu.dimension_semantics<arbitrary>], iteration_bounds = array<i64: 2, 2>, scalar_prefetch = 0 : i64, scratch_operands = 0 : i64, tpu.core_type = #tpu.core_type<tc>, window_params = [{transform_indices = @transform_0, window_bounds = array<i64: 1, 8, 32>}, {transform_indices = @transform_1, window_bounds = array<i64: 1, 1, 8>}, {transform_indices = @transform_2, window_bounds = array<i64: 1, 32, 96>}, {transform_indices = @transform_3, window_bounds = array<i64: 1, 32, 32>}, {transform_indices = @transform_4, window_bounds = array<i64: 1, 32, 64>}, {transform_indices = @transform_5, window_bounds = array<i64: 1, 64, 32>}, {transform_indices = @transform_6, window_bounds = array<i64: 1, 8, 96>}, {transform_indices = @transform_7, window_bounds = array<i64: 1, 8, 32>}]} {
    %c0_i32 = arith.constant 0 : i32
    %0 = arith.cmpi eq, %arg1, %c0_i32 : i32
    %1 = arith.extui %0 : i1 to i32
    %c0_i32_0 = arith.constant 0 : i32
    %2 = arith.cmpi ne, %1, %c0_i32_0 : i32
    scf.if %2 {
      %c0_46 = arith.constant 0 : index
      %c0_47 = arith.constant 0 : index
      %c0_48 = arith.constant 0 : index
      %153 = vector.load %arg2[%c0_46, %c0_47, %c0_48] : memref<1x8x32xf32, #tpu.memory_space<vmem>>, vector<1x8x32xf32>
      %154 = vector.shape_cast %153 : vector<1x8x32xf32> to vector<8x32xf32>
      %c0_49 = arith.constant 0 : index
      %c0_50 = arith.constant 0 : index
      %c0_51 = arith.constant 0 : index
      %155 = vector.load %arg9[%c0_49, %c0_50, %c0_51] : memref<1x8x32xf32, #tpu.memory_space<vmem>>, vector<1x8x32xf32>
      %156 = vector.shape_cast %155 : vector<1x8x32xf32> to vector<8x32xf32>
      %157 = vector.shape_cast %154 : vector<8x32xf32> to vector<1x8x32xf32>
      tpu.vector_store %arg9[%c0_49, %c0_50, %c0_51], %157 {strides = array<i32>} : memref<1x8x32xf32, #tpu.memory_space<vmem>>, vector<1x8x32xf32>,
    } else {
    }
    %c0 = arith.constant 0 : index
    %c0_1 = arith.constant 0 : index
    %c0_2 = arith.constant 0 : index
    %3 = vector.load %arg9[%c0, %c0_1, %c0_2] : memref<1x8x32xf32, #tpu.memory_space<vmem>>, vector<1x8x32xf32>
    %4 = vector.shape_cast %3 : vector<1x8x32xf32> to vector<8x32xf32>
    %c0_3 = arith.constant 0 : index
    %c0_4 = arith.constant 0 : index
    %c0_5 = arith.constant 0 : index
    %5 = vector.load %arg8[%c0_3, %c0_4, %c0_5] : memref<1x8x96xf32, #tpu.memory_space<vmem>>, vector<1x8x96xf32>
    %6 = vector.shape_cast %5 : vector<1x8x96xf32> to vector<8x96xf32>
    %7 = vector.extract_strided_slice %6 {offsets = [0, 0], sizes = [1, 96], strides = [1, 1]} : vector<8x96xf32> to vector<1x96xf32>
    %8 = vector.extract_strided_slice %6 {offsets = [1, 0], sizes = [1, 64], strides = [1, 1]} : vector<8x96xf32> to vector<1x64xf32>
    %9 = vector.extract_strided_slice %6 {offsets = [2, 0], sizes = [1, 32], strides = [1, 1]} : vector<8x96xf32> to vector<1x32xf32>
    %10 = vector.extract_strided_slice %6 {offsets = [3, 0], sizes = [1, 32], strides = [1, 1]} : vector<8x96xf32> to vector<1x32xf32>
    %11 = vector.extract_strided_slice %6 {offsets = [4, 0], sizes = [1, 32], strides = [1, 1]} : vector<8x96xf32> to vector<1x32xf32>
    %12 = vector.extract_strided_slice %6 {offsets = [5, 0], sizes = [1, 32], strides = [1, 1]} : vector<8x96xf32> to vector<1x32xf32>
    %13 = vector.extract_strided_slice %6 {offsets = [6, 0], sizes = [1, 32], strides = [1, 1]} : vector<8x96xf32> to vector<1x32xf32>
    %14 = vector.extract_strided_slice %6 {offsets = [7, 0], sizes = [1, 32], strides = [1, 1]} : vector<8x96xf32> to vector<1x32xf32>
    %15 = arith.truncf %4 : vector<8x32xf32> to vector<8x32xbf16>
    %c0_6 = arith.constant 0 : index
    %c0_7 = arith.constant 0 : index
    %c0_8 = arith.constant 0 : index
    %16 = vector.load %arg4[%c0_6, %c0_7, %c0_8] : memref<1x32x96xbf16, #tpu.memory_space<vmem>>, vector<1x32x96xbf16>
    %17 = vector.shape_cast %16 : vector<1x32x96xbf16> to vector<32x96xbf16>
    %cst = arith.constant dense<0.000000e+00> : vector<8x96xf32>
    %18 = tpu.matmul %15, %17, %cst {dimension_numbers = #tpu.dot_dimension_numbers<[1], [0], [0], [1], [0, 0, 1, 1], [], []>} : vector<8x32xbf16>, vector<32x96xbf16>, vector<8x96xf32> -> vector<8x96xf32>
    %19 = vector.broadcast %7 : vector<1x96xf32> to vector<8x96xf32>
    %20 = arith.addf %18, %19 : vector<8x96xf32>
    %21 = vector.extract_strided_slice %20 {offsets = [0, 0], sizes = [8, 8], strides = [1, 1]} : vector<8x96xf32> to vector<8x8xf32>
    %22 = vector.extract_strided_slice %20 {offsets = [0, 8], sizes = [8, 8], strides = [1, 1]} : vector<8x96xf32> to vector<8x8xf32>
    %23 = vector.extract_strided_slice %20 {offsets = [0, 16], sizes = [8, 8], strides = [1, 1]} : vector<8x96xf32> to vector<8x8xf32>
    %24 = vector.extract_strided_slice %20 {offsets = [0, 24], sizes = [8, 8], strides = [1, 1]} : vector<8x96xf32> to vector<8x8xf32>
    %25 = vector.shape_cast %21 : vector<8x8xf32> to vector<1x8x8xf32>
    %26 = vector.shape_cast %22 : vector<8x8xf32> to vector<1x8x8xf32>
    %27 = vector.shape_cast %23 : vector<8x8xf32> to vector<1x8x8xf32>
    %28 = vector.shape_cast %24 : vector<8x8xf32> to vector<1x8x8xf32>
    %29 = tpu.concatenate %25, %26, %27, %28 in 0 : vector<1x8x8xf32>, vector<1x8x8xf32>, vector<1x8x8xf32>, vector<1x8x8xf32> -> vector<4x8x8xf32>
    %30 = arith.truncf %29 : vector<4x8x8xf32> to vector<4x8x8xbf16>
    %31 = vector.extract_strided_slice %20 {offsets = [0, 32], sizes = [8, 8], strides = [1, 1]} : vector<8x96xf32> to vector<8x8xf32>
    %32 = vector.extract_strided_slice %20 {offsets = [0, 40], sizes = [8, 8], strides = [1, 1]} : vector<8x96xf32> to vector<8x8xf32>
    %33 = vector.extract_strided_slice %20 {offsets = [0, 48], sizes = [8, 8], strides = [1, 1]} : vector<8x96xf32> to vector<8x8xf32>
    %34 = vector.extract_strided_slice %20 {offsets = [0, 56], sizes = [8, 8], strides = [1, 1]} : vector<8x96xf32> to vector<8x8xf32>
    %35 = vector.shape_cast %31 : vector<8x8xf32> to vector<1x8x8xf32>
    %36 = vector.shape_cast %32 : vector<8x8xf32> to vector<1x8x8xf32>
    %37 = vector.shape_cast %33 : vector<8x8xf32> to vector<1x8x8xf32>
    %38 = vector.shape_cast %34 : vector<8x8xf32> to vector<1x8x8xf32>
    %39 = tpu.concatenate %35, %36, %37, %38 in 0 : vector<1x8x8xf32>, vector<1x8x8xf32>, vector<1x8x8xf32>, vector<1x8x8xf32> -> vector<4x8x8xf32>
    %40 = arith.truncf %39 : vector<4x8x8xf32> to vector<4x8x8xbf16>
    %41 = vector.extract_strided_slice %20 {offsets = [0, 64], sizes = [8, 8], strides = [1, 1]} : vector<8x96xf32> to vector<8x8xf32>
    %42 = vector.extract_strided_slice %20 {offsets = [0, 72], sizes = [8, 8], strides = [1, 1]} : vector<8x96xf32> to vector<8x8xf32>
    %43 = vector.extract_strided_slice %20 {offsets = [0, 80], sizes = [8, 8], strides = [1, 1]} : vector<8x96xf32> to vector<8x8xf32>
    %44 = vector.extract_strided_slice %20 {offsets = [0, 88], sizes = [8, 8], strides = [1, 1]} : vector<8x96xf32> to vector<8x8xf32>
    %45 = vector.shape_cast %41 : vector<8x8xf32> to vector<1x8x8xf32>
    %46 = vector.shape_cast %42 : vector<8x8xf32> to vector<1x8x8xf32>
    %47 = vector.shape_cast %43 : vector<8x8xf32> to vector<1x8x8xf32>
    %48 = vector.shape_cast %44 : vector<8x8xf32> to vector<1x8x8xf32>
    %49 = tpu.concatenate %45, %46, %47, %48 in 0 : vector<1x8x8xf32>, vector<1x8x8xf32>, vector<1x8x8xf32>, vector<1x8x8xf32> -> vector<4x8x8xf32>
    %50 = arith.truncf %49 : vector<4x8x8xf32> to vector<4x8x8xbf16>
    "tpu.trace_start"() <{level = 10 : i32, message = "hqw,hkw->hqk"}> : () -> ()
    %cst_9 = arith.constant dense<0.000000e+00> : vector<4x8x8xf32>
    %51 = tpu.matmul %30, %40, %cst_9 {dimension_numbers = #tpu.dot_dimension_numbers<[2], [2], [1], [1], [0, 0, 0, 1, 1, 1], [0], [0]>} : vector<4x8x8xbf16>, vector<4x8x8xbf16>, vector<4x8x8xf32> -> vector<4x8x8xf32>
    "tpu.trace_stop"() : () -> ()
    %c0_10 = arith.constant 0 : index
    %c0_11 = arith.constant 0 : index
    %c0_12 = arith.constant 0 : index
    %52 = vector.load %arg3[%c0_10, %c0_11, %c0_12] : memref<1x1x8xf32, #tpu.memory_space<vmem>>, vector<1x1x8xf32>
    %53 = vector.shape_cast %52 : vector<1x1x8xf32> to vector<1x8xf32>
    %cst_13 = arith.constant 1.000000e+00 : f32
    %54 = vector.broadcast %cst_13 : f32 to vector<1x8xf32>
    %55 = arith.subf %54, %53 : vector<1x8xf32>
    %56 = vector.shape_cast %55 : vector<1x8xf32> to vector<1x1x8xf32>
    %cst_14 = arith.constant 1.000000e+04 : f32
    %57 = vector.broadcast %cst_14 : f32 to vector<1x1x8xf32>
    %58 = arith.mulf %57, %56 : vector<1x1x8xf32>
    %59 = vector.broadcast %58 : vector<1x1x8xf32> to vector<4x8x8xf32>
    %60 = arith.subf %51, %59 : vector<4x8x8xf32>
    %cst_15 = arith.constant dense<0xFF800000> : vector<4x8xf32>
    %61 = vector.multi_reduction <maximumf>, %60, %cst_15 [2] : vector<4x8x8xf32> to vector<4x8xf32>
    %62 = vector.shape_cast %61 : vector<4x8xf32> to vector<4x8x1xf32>
    %63 = vector.broadcast %62 : vector<4x8x1xf32> to vector<4x8x8xf32>
    %64 = arith.subf %60, %63 : vector<4x8x8xf32>
    %65 = math.exp %64 : vector<4x8x8xf32>
    %cst_16 = arith.constant dense<0.000000e+00> : vector<4x8xf32>
    %66 = vector.multi_reduction <add>, %65, %cst_16 [2] : vector<4x8x8xf32> to vector<4x8xf32>
    %67 = vector.shape_cast %66 : vector<4x8xf32> to vector<4x8x1xf32>
    %68 = tpu.reciprocal %67 {approx = true} : vector<4x8x1xf32> -> vector<4x8x1xf32>
    %69 = vector.broadcast %68 : vector<4x8x1xf32> to vector<4x8x8xf32>
    %70 = arith.mulf %65, %69 : vector<4x8x8xf32>
    %71 = arith.truncf %70 : vector<4x8x8xf32> to vector<4x8x8xbf16>
    "tpu.trace_start"() <{level = 10 : i32, message = "hqk,hkw->hqw"}> : () -> ()
    %cst_17 = arith.constant dense<0.000000e+00> : vector<4x8x8xf32>
    %72 = tpu.matmul %71, %50, %cst_17 {dimension_numbers = #tpu.dot_dimension_numbers<[2], [1], [1], [2], [0, 0, 0, 1, 1, 2], [0], [0]>} : vector<4x8x8xbf16>, vector<4x8x8xbf16>, vector<4x8x8xf32> -> vector<4x8x8xf32>
    "tpu.trace_stop"() : () -> ()
    %73 = vector.extract_strided_slice %72 {offsets = [0, 0, 0], sizes = [1, 8, 8], strides = [1, 1, 1]} : vector<4x8x8xf32> to vector<1x8x8xf32>
    %74 = vector.shape_cast %73 : vector<1x8x8xf32> to vector<8x8xf32>
    %75 = vector.extract_strided_slice %72 {offsets = [1, 0, 0], sizes = [1, 8, 8], strides = [1, 1, 1]} : vector<4x8x8xf32> to vector<1x8x8xf32>
    %76 = vector.shape_cast %75 : vector<1x8x8xf32> to vector<8x8xf32>
    %77 = vector.extract_strided_slice %72 {offsets = [2, 0, 0], sizes = [1, 8, 8], strides = [1, 1, 1]} : vector<4x8x8xf32> to vector<1x8x8xf32>
    %78 = vector.shape_cast %77 : vector<1x8x8xf32> to vector<8x8xf32>
    %79 = vector.extract_strided_slice %72 {offsets = [3, 0, 0], sizes = [1, 8, 8], strides = [1, 1, 1]} : vector<4x8x8xf32> to vector<1x8x8xf32>
    %80 = vector.shape_cast %79 : vector<1x8x8xf32> to vector<8x8xf32>
    %81 = tpu.concatenate %74, %76, %78, %80 in 1 : vector<8x8xf32>, vector<8x8xf32>, vector<8x8xf32>, vector<8x8xf32> -> vector<8x32xf32>
    %82 = arith.truncf %81 : vector<8x32xf32> to vector<8x32xbf16>
    %c0_18 = arith.constant 0 : index
    %c0_19 = arith.constant 0 : index
    %c0_20 = arith.constant 0 : index
    %83 = vector.load %arg5[%c0_18, %c0_19, %c0_20] : memref<1x32x32xbf16, #tpu.memory_space<vmem>>, vector<1x32x32xbf16>
    %84 = vector.shape_cast %83 : vector<1x32x32xbf16> to vector<32x32xbf16>
    %cst_21 = arith.constant dense<0.000000e+00> : vector<8x32xf32>
    %85 = tpu.matmul %82, %84, %cst_21 {dimension_numbers = #tpu.dot_dimension_numbers<[1], [0], [0], [1], [0, 0, 1, 1], [], []>} : vector<8x32xbf16>, vector<32x32xbf16>, vector<8x32xf32> -> vector<8x32xf32>
    %86 = vector.broadcast %9 : vector<1x32xf32> to vector<8x32xf32>
    %87 = arith.addf %85, %86 : vector<8x32xf32>
    %88 = arith.addf %4, %87 : vector<8x32xf32>
    %cst_22 = arith.constant dense<0.000000e+00> : vector<8xf32>
    %89 = vector.multi_reduction <add>, %88, %cst_22 [1] : vector<8x32xf32> to vector<8xf32>
    %90 = vector.shape_cast %89 : vector<8xf32> to vector<8x1xf32>
    %cst_23 = arith.constant 3.200000e+01 : f32
    %91 = vector.broadcast %cst_23 : f32 to vector<8x1xf32>
    %92 = arith.divf %90, %91 : vector<8x1xf32>
    %93 = vector.broadcast %92 : vector<8x1xf32> to vector<8x32xf32>
    %94 = arith.subf %88, %93 : vector<8x32xf32>
    %95 = arith.mulf %94, %94 : vector<8x32xf32>
    %cst_24 = arith.constant dense<0.000000e+00> : vector<8xf32>
    %96 = vector.multi_reduction <add>, %95, %cst_24 [1] : vector<8x32xf32> to vector<8xf32>
    %97 = vector.shape_cast %96 : vector<8xf32> to vector<8x1xf32>
    %cst_25 = arith.constant 3.200000e+01 : f32
    %98 = vector.broadcast %cst_25 : f32 to vector<8x1xf32>
    %99 = arith.divf %97, %98 : vector<8x1xf32>
    %cst_26 = arith.constant 9.99999996E-13 : f32
    %100 = vector.broadcast %cst_26 : f32 to vector<8x1xf32>
    %101 = arith.addf %99, %100 : vector<8x1xf32>
    %102 = math.rsqrt %101 : vector<8x1xf32>
    %103 = vector.broadcast %102 : vector<8x1xf32> to vector<8x32xf32>
    %104 = arith.mulf %94, %103 : vector<8x32xf32>
    %105 = vector.broadcast %10 : vector<1x32xf32> to vector<8x32xf32>
    %106 = arith.mulf %105, %104 : vector<8x32xf32>
    %107 = vector.broadcast %11 : vector<1x32xf32> to vector<8x32xf32>
    %108 = arith.addf %106, %107 : vector<8x32xf32>
    %109 = arith.truncf %108 : vector<8x32xf32> to vector<8x32xbf16>
    %c0_27 = arith.constant 0 : index
    %c0_28 = arith.constant 0 : index
    %c0_29 = arith.constant 0 : index
    %110 = vector.load %arg6[%c0_27, %c0_28, %c0_29] : memref<1x32x64xbf16, #tpu.memory_space<vmem>>, vector<1x32x64xbf16>
    %111 = vector.shape_cast %110 : vector<1x32x64xbf16> to vector<32x64xbf16>
    %cst_30 = arith.constant dense<0.000000e+00> : vector<8x64xf32>
    %112 = tpu.matmul %109, %111, %cst_30 {dimension_numbers = #tpu.dot_dimension_numbers<[1], [0], [0], [1], [0, 0, 1, 1], [], []>} : vector<8x32xbf16>, vector<32x64xbf16>, vector<8x64xf32> -> vector<8x64xf32>
    %113 = vector.broadcast %8 : vector<1x64xf32> to vector<8x64xf32>
    %114 = arith.addf %112, %113 : vector<8x64xf32>
    %cst_31 = arith.constant 5.000000e-01 : f32
    %115 = vector.broadcast %cst_31 : f32 to vector<8x64xf32>
    %116 = arith.mulf %114, %115 : vector<8x64xf32>
    %cst_32 = arith.constant 1.41421354 : f32
    %117 = vector.broadcast %cst_32 : f32 to vector<8x64xf32>
    %118 = arith.divf %114, %117 : vector<8x64xf32>
    %119 = math.erf %118 : vector<8x64xf32>
    %cst_33 = arith.constant 1.000000e+00 : f32
    %120 = vector.broadcast %cst_33 : f32 to vector<8x64xf32>
    %121 = arith.addf %120, %119 : vector<8x64xf32>
    %122 = arith.mulf %116, %121 : vector<8x64xf32>
    %123 = arith.truncf %122 : vector<8x64xf32> to vector<8x64xbf16>
    %c0_34 = arith.constant 0 : index
    %c0_35 = arith.constant 0 : index
    %c0_36 = arith.constant 0 : index
    %124 = vector.load %arg7[%c0_34, %c0_35, %c0_36] : memref<1x64x32xbf16, #tpu.memory_space<vmem>>, vector<1x64x32xbf16>
    %125 = vector.shape_cast %124 : vector<1x64x32xbf16> to vector<64x32xbf16>
    %cst_37 = arith.constant dense<0.000000e+00> : vector<8x32xf32>
    %126 = tpu.matmul %123, %125, %cst_37 {dimension_numbers = #tpu.dot_dimension_numbers<[1], [0], [0], [1], [0, 0, 1, 1], [], []>} : vector<8x64xbf16>, vector<64x32xbf16>, vector<8x32xf32> -> vector<8x32xf32>
    %127 = vector.broadcast %12 : vector<1x32xf32> to vector<8x32xf32>
    %128 = arith.addf %126, %127 : vector<8x32xf32>
    %129 = arith.addf %108, %128 : vector<8x32xf32>
    %cst_38 = arith.constant dense<0.000000e+00> : vector<8xf32>
    %130 = vector.multi_reduction <add>, %129, %cst_38 [1] : vector<8x32xf32> to vector<8xf32>
    %131 = vector.shape_cast %130 : vector<8xf32> to vector<8x1xf32>
    %cst_39 = arith.constant 3.200000e+01 : f32
    %132 = vector.broadcast %cst_39 : f32 to vector<8x1xf32>
    %133 = arith.divf %131, %132 : vector<8x1xf32>
    %134 = vector.broadcast %133 : vector<8x1xf32> to vector<8x32xf32>
    %135 = arith.subf %129, %134 : vector<8x32xf32>
    %136 = arith.mulf %135, %135 : vector<8x32xf32>
    %cst_40 = arith.constant dense<0.000000e+00> : vector<8xf32>
    %137 = vector.multi_reduction <add>, %136, %cst_40 [1] : vector<8x32xf32> to vector<8xf32>
    %138 = vector.shape_cast %137 : vector<8xf32> to vector<8x1xf32>
    %cst_41 = arith.constant 3.200000e+01 : f32
    %139 = vector.broadcast %cst_41 : f32 to vector<8x1xf32>
    %140 = arith.divf %138, %139 : vector<8x1xf32>
    %cst_42 = arith.constant 9.99999996E-13 : f32
    %141 = vector.broadcast %cst_42 : f32 to vector<8x1xf32>
    %142 = arith.addf %140, %141 : vector<8x1xf32>
    %143 = math.rsqrt %142 : vector<8x1xf32>
    %144 = vector.broadcast %143 : vector<8x1xf32> to vector<8x32xf32>
    %145 = arith.mulf %135, %144 : vector<8x32xf32>
    %146 = vector.broadcast %13 : vector<1x32xf32> to vector<8x32xf32>
    %147 = arith.mulf %146, %145 : vector<8x32xf32>
    %148 = vector.broadcast %14 : vector<1x32xf32> to vector<8x32xf32>
    %149 = arith.addf %147, %148 : vector<8x32xf32>
    %c0_43 = arith.constant 0 : index
    %c0_44 = arith.constant 0 : index
    %c0_45 = arith.constant 0 : index
    %150 = vector.load %arg9[%c0_43, %c0_44, %c0_45] : memref<1x8x32xf32, #tpu.memory_space<vmem>>, vector<1x8x32xf32>
    %151 = vector.shape_cast %150 : vector<1x8x32xf32> to vector<8x32xf32>
    %152 = vector.shape_cast %149 : vector<8x32xf32> to vector<1x8x32xf32>
    tpu.vector_store %arg9[%c0_43, %c0_44, %c0_45], %152 {strides = array<i32>} : memref<1x8x32xf32, #tpu.memory_space<vmem>>, vector<1x8x32xf32>,
    return
  }
  func.func @transform_0(%arg0: i32, %arg1: i32) -> (i32, i32, i32) {
    %c0_i32 = arith.constant 0 : i32
    %c0_i32_0 = arith.constant 0 : i32
    %c0_i32_1 = arith.constant 0 : i32
    return %arg0, %c0_i32, %c0_i32_0 : i32, i32, i32
  }
  func.func @transform_1(%arg0: i32, %arg1: i32) -> (i32, i32, i32) {
    %c0_i32 = arith.constant 0 : i32
    %c0_i32_0 = arith.constant 0 : i32
    %c0_i32_1 = arith.constant 0 : i32
    return %arg0, %c0_i32, %c0_i32_0 : i32, i32, i32
  }
  func.func @transform_2(%arg0: i32, %arg1: i32) -> (i32, i32, i32) {
    %c0_i32 = arith.constant 0 : i32
    %c0_i32_0 = arith.constant 0 : i32
    %c0_i32_1 = arith.constant 0 : i32
    return %arg1, %c0_i32, %c0_i32_0 : i32, i32, i32
  }
  func.func @transform_3(%arg0: i32, %arg1: i32) -> (i32, i32, i32) {
    %c0_i32 = arith.constant 0 : i32
    %c0_i32_0 = arith.constant 0 : i32
    %c0_i32_1 = arith.constant 0 : i32
    return %arg1, %c0_i32, %c0_i32_0 : i32, i32, i32
  }
  func.func @transform_4(%arg0: i32, %arg1: i32) -> (i32, i32, i32) {
    %c0_i32 = arith.constant 0 : i32
    %c0_i32_0 = arith.constant 0 : i32
    %c0_i32_1 = arith.constant 0 : i32
    return %arg1, %c0_i32, %c0_i32_0 : i32, i32, i32
  }
  func.func @transform_5(%arg0: i32, %arg1: i32) -> (i32, i32, i32) {
    %c0_i32 = arith.constant 0 : i32
    %c0_i32_0 = arith.constant 0 : i32
    %c0_i32_1 = arith.constant 0 : i32
    return %arg1, %c0_i32, %c0_i32_0 : i32, i32, i32
  }
  func.func @transform_6(%arg0: i32, %arg1: i32) -> (i32, i32, i32) {
    %c0_i32 = arith.constant 0 : i32
    %c0_i32_0 = arith.constant 0 : i32
    %c0_i32_1 = arith.constant 0 : i32
    return %arg1, %c0_i32, %c0_i32_0 : i32, i32, i32
  }
  func.func @transform_7(%arg0: i32, %arg1: i32) -> (i32, i32, i32) {
    %c0_i32 = arith.constant 0 : i32
    %c0_i32_0 = arith.constant 0 : i32
    %c0_i32_1 = arith.constant 0 : i32
    return %arg0, %c0_i32, %c0_i32_0 : i32, i32, i32
  }
}

</mosaic_0001>

<bundles_post_ra>
// kernel: tpu_custom_call.1
= control target key start
LH: loop header
LB: loop body
LE: loop exit
PB: predicated region body
PF: predicated region fallthrough
CT: control target
= control target key end

     0   :  { %s2233_s0 = inlined_call_operand.hbm [shape: f32[2,8,32], index: 0, kind: input, shape index: {}]   ;;  %s2234_s1 = inlined_call_operand.vmem [shape: f32[2,1,8], index: 1, kind: input, shape index: {}]   ;;  %s2235_s2 = inlined_call_operand.vmem [shape: bf16[2,32,96], index: 2, kind: input, shape index: {}]   ;;  %s2236_s3 = inlined_call_operand.vmem [shape: bf16[2,32,32], index: 3, kind: input, shape index: {}]   ;;  %s2237_s4 = inlined_call_operand.vmem [shape: bf16[2,32,64], index: 4, kind: input, shape index: {}]   ;;  %s2238_s5 = inlined_call_operand.vmem [shape: bf16[2,64,32], index: 5, kind: input, shape index: {}]   ;;  %s2239_s6 = inlined_call_operand.vmem [shape: f32[2,8,96], index: 6, kind: input, shape index: {}]   ;;  %s2240_s7 = inlined_call_operand.hbm [shape: f32[2,8,32], index: 7, kind: output, shape index: {}]  }
   0x1   :  { %2252 = sst [smem:[#allocation18_spill]] %s2233_s0 }
   0x2   :  { %2253 = sst [smem:[#allocation19_spill]] %s2240_s7 }
   0x3   :  { %12 = vsyncpa [#allocation3], 0 }
   0x4   :  { %14 = vsyncpa [#allocation3 + $0x1], 0 }
   0x5   :  { %15 = vsyncpa [#allocation4], 0 }
   0x6   :  { %17 = vsyncpa [#allocation4 + $0x1], 0  ;;  %s1868_s24 = smov 0   ;;  %s1870_s25 = smov 0  }
   0x7   :  { %s1872_s26 = smov 0   ;;  %s1874_s27 = smov 0  }
   0x8   :  { %s1876_s28 = smov 0   ;;  %s1878_s29 = smov 0  }
   0x9   :  { %s1880_s30 = smov 0   ;;  %s1882_s8 = smov 0  }
   0xa LB: > { %2254 = sst [smem:[#allocation8_spill]] %s1786_s24  ;;  %s1403_s9 = sadd.s32 4294967295, %s1814_s8   ;;  %s1814_s8 = sphi %s1882_s8, %s23_s8   ;;  %s1810_s30 = sphi %s1880_s30, %s2285_s30   ;;  %s1806_s29 = sphi %s1878_s29, %s2284_s29   ;;  %s1802_s28 = sphi %s1876_s28, %s2283_s28   ;;  %s1798_s27 = sphi %s1874_s27, %s2282_s27   ;;  %s1794_s26 = sphi %s1872_s26, %s2281_s26   ;;  %s1790_s25 = sphi %s1870_s25, %s2280_s25   ;;  %s1786_s24 = sphi %s1868_s24, %s2279_s24  }
   0xb   : > { %2255 = sst [smem:[#allocation9_spill]] %s1790_s25  ;;  %s1404_s10 = sadd.s32 4294967294, %s1814_s8  }
   0xc   : > { %2256 = sst [smem:[#allocation10_spill]] %s1794_s26  ;;  %s32_s11 = sadd.s32 1, %s1806_s29 }
   0xd   : > { %2257 = sst [smem:[#allocation11_spill]] %s1806_s29  ;;  %s35_s12 = sadd.s32 1, %s1810_s30 }
   0xe   : > { %2258 = sst [smem:[#allocation12_spill]] %s1810_s30  ;;  %p33_p0 = scmp.ge.s32.totalorder %s32_s11, 2 }
   0xf   : > { %2259 = sst [smem:[#allocation13_spill]] %s1814_s8  ;;  %s42_s13 = sadd.s32 1, %s1794_s26 }
  0x10   : > { %p49_p1 = scmp.ne.s32.totalorder %s1794_s26, %s1790_s25  ;;  %p50_p2 = scmp.eq.s32.totalorder %s1814_s8, 0 }
  0x11   : > { %s2287_s11 = smov (%p33_p0, %s32_s11), 0  ;;  %s2289_s12 = smov (!%p33_p0, %s35_s12), %s1810_s30 }
  0x12   : > { %2260 = sst [smem:[#allocation14_spill]] %s2287_s11  ;;  %p1919_p3 = por %p50_p2, %p49_p1 }
  0x13   : > { %p55_p4 = scmp.ne.s32.totalorder %s1790_s25, %s1786_s24  ;;  %p37_p5 = scmp.ge.s32.totalorder %s2289_s12, 2 }
  0x14   : > { %p56_p6 = scmp.eq.s32.totalorder %s1403_s9, 0  ;;  %p235_p7 = scmp.eq.s32.totalorder %s1403_s9, 3 }
  0x15   : > { %p241_p8 = scmp.eq.s32.totalorder %s1404_s10, 3  ;;  %s2291_s12 = smov (%p37_p5, %s2289_s12), 0 }
  0x16   : > { %2262 = sst [smem:[#allocation15_spill]] %s2291_s12  ;;  %p1927_p9 = por %p56_p6, %p55_p4 }
  0x17   : > { %p1931_p10 = por %p235_p7, %p49_p1  ;;  %s39_s17 = ssub.s32 %s1810_s30, %s2291_s12 }
  0x18   : > { %p1937_p11 = por %p241_p8, %p55_p4  ;;  %p40_p12 = scmp.eq.s32.totalorder %s39_s17, 0 }
  0x19   : > { %s2264_s16 = scalar_select %p1931_p10, 1, 0 }
  0x1a   : > { %s2265_s18 = scalar_select %p1937_p11, 1, 0 }
  0x1b   : > { %p1578_p13 = scmp.lt.s32.totalorder %s1814_s8, 4  ;;  %s261_s19 = sand.u32 1, %s1794_s26  }
  0x1c   : > { %2266 = sst [smem:[#allocation16_spill]] %s2265_s18  ;;  %s1407_s21 = sshll.u32 %s261_s19, 3 }
  0x1d   : > { %s1944_s20 = scalar_select %p40_p12, %s1794_s26, %s42_s13  }
  0x1e   : > { %s1408_s22 = sshll.u32 %s1810_s30, 7  ;;  %s2268_s0 = sld [smem:[#allocation18_spill]] }
  0x1f   : > { %2267 = sst [smem:[#allocation17_spill]] %s1944_s20  ;;  %s265_s12 = scalar_lea.vmem [#allocation2], %s1407_s21 }
  0x20   : > { %s272_s11 = sshll.u32 %s265_s12, 4  ;;  %p1956_p0 = pnand %p1578_p13, %p1919_p3  ;;  %s1952_s11 = int_to_ptr.vmem [resolvable:$true] %s272_s11 }
  0x21   : > { %s262_s13 = scalar_lea.sflag [#allocation3], %s261_s19 }
  0x22   : > { %p1688_p5 = pneg %p1956_p0 }
  0x24   : > { %s1950_s10 = scalar_lea.hbm %s2268_s0, %s1408_s22  ;;  %s1691_s14 = scalar_lea.hbm %s2268_s0, 256 }
  0x25   : > { %s1686_s22 = scalar_lea.hbm %s1950_s10, 128  ;;  %p1692_p3 = scmp.lt.u32.totalorder %s1950_s10, %s2268_s0 }
  0x26   : > { %p1687_p4 = scmp.ne.s32.totalorder %s1950_s10, %s1686_s22  ;;  %p1693_p8 = scmp.lt.u32.totalorder %s1691_s14, %s1686_s22 }
  0x27   : > { %p1695_p13 = scmp.lt.u32.totalorder %s1686_s22, %s1950_s10 }
  0x28   : > { %p1689_p6 = pnand %p1688_p5, %p1687_p4  ;;  %p1694_p12 = por %p1693_p8, %p1692_p3 }
  0x2a   : > { %p1690_p7 = pneg %p1689_p6  ;;  %p1696_p1 = por %p1695_p13, %p1694_p12 }
  0x2c   : > { %p1697_p2 = pnand %p1696_p1, %p1690_p7 }
  0x2e   : > { %1700 = shalt.err (!%p1697_p2)
}
  0x2f   : > { %s1701_s19 = scalar_lea.vmem %s1952_s11, 128  ;;  %s1816_s12 = smov [#allocation2]  }
  0x30   : > { %p1702_p4 = scmp.ne.s32.totalorder %s1952_s11, %s1701_s19  ;;  %s1706_s21 = sshll.u32 %s1816_s12, 4  ;;  %s1707_s21 = int_to_ptr.vmem [resolvable:$false] %s1706_s21 }
  0x31   : > { %s1708_s23 = scalar_lea.vmem %s1707_s21, 256  ;;  %p1709_p10 = scmp.lt.s32.totalorder %s1952_s11, %s1707_s21 }
  0x32   : > { %p1704_p6 = pnand %p1702_p4, %p1688_p5  ;;  %p1710_p3 = scmp.lt.s32.totalorder %s1708_s23, %s1701_s19 }
  0x34   : > { %p1705_p11 = pneg %p1704_p6  ;;  %p1711_p8 = por %p1710_p3, %p1709_p10 }
  0x36   : > { %p1712_p12 = pnand %p1711_p8, %p1705_p11 }
  0x38   : > { %1715 = shalt.err (!%p1712_p12)
}
  0x39   : > { %1573 = dma.hbm_to_vmem [thread:$0]  (!%p1956_p0), %s1950_s10, 128, %s1952_s11, %s262_s13  }
  0x3a   : > { %p2270_p1 = scmp.lt.s32.totalorder %s1814_s8, 5  ;;  %p2271_p2 = scmp.ge.s32.totalorder %s1814_s8, 1 }
  0x3c   : > { %p323_p5 = pnand %p2271_p2, %p2270_p1 }
  0x3d   : > { %s1992_s22 = sand.u32 (!%p323_p5), 1, %s1790_s25  }
  0x3e   : > { %326 = sbr.rel (%p323_p5) target bundleno = 2719 (0xa9f), region = 48  ;;  %s1410_s14 = sshll.u32 (!%p323_p5), %s1992_s22, 3 }
  0x3f   : > { %s329_s9 = scalar_lea.sflag (!%p323_p5), [#allocation3], %s1992_s22  ;;  %s332_s19 = scalar_lea.vmem (!%p323_p5), [#allocation2], %s1410_s14 }
  0x45   : > { %1777 = dma.done.wait (%p1927_p9), %s329_s9, 128  }
  0x46   : > { %1779 = vsyncadd (%p1927_p9), %s329_s9, 4294967168  ;;  %p390_p10 = scmp.lt.s32.totalorder %s1802_s28, 1  ;;  %p393_p11 = scmp.lt.s32.totalorder %s1798_s27, 1 }
  0x47   : > { %s2031_s30 = scalar_lea.vmem [#allocation5], %s1410_s14  ;;  %p1421_p9 = scmp.ne.s32.totalorder %s1798_s27, 0 }
  0x48   : > { %s2003_s11 = scalar_select %p390_p10, %s1802_s28, 1 }
  0x49   : > { %s394_s10 = scalar_select %p393_p11, %s1798_s27, 1 }
  0x4a   : > { %421 = sbr.rel (%p1421_p9) target bundleno = 81 (0x51), region = 56  ;;  %v422_v0 = vld [vmem:[%s332_s19] sm:$0xff] (!%p1421_p9)  ;;  %vm423_vm0 = vcmask (!%p1421_p9), 261120  }
  0x4b   : > { %s1448_s21 = sshll.u32 %s394_s10, 4  ;;  %s1451_s23 = sshll.u32 %s394_s10, 5  ;;  %424 = vst.msk [vmem:[%s2031_s30] sm:$0xff] (!%p1421_p9), %vm423_vm0, %v422_v0 }
  0x4c   : > { %s397_s15 = scalar_lea.vmem %s2235_s2, %s1448_s21  ;;  %s2016_s20 = scalar_lea.vmem %s2236_s3, %s1448_s21 }
  0x4d   : > { %s2021_s18 = scalar_lea.vmem %s2237_s4, %s1448_s21  ;;  %s2026_s17 = scalar_lea.vmem %s2238_s5, %s1451_s23 }
  0x4e   : > { %s1420_s13 = sshll.u32 %s394_s10, 3 }
  0x4f   : > { %s416_s0 = scalar_lea.vmem %s2239_s6, %s1420_s13 }
  0x51 PF: > { %v1654_v1 = vld [vmem:[%s397_s15] sm:$0xff]   ;;  %v1817_v2 = vmov 0.0   ;;  %v1655_v3 = vld [vmem:[%s397_s15 + $0x8] sm:$0xff]   ;;  %vm1818_vm1 = vmmov 0   ;;  %vm448_vm2 = vcmask 261120   ;;  %v432_v6 = vlaneseq  ;;  %s1819_s7 = smov 104   ;;  %s2272_s8 = scalar_lea.vmem %s2234_s1, %s2003_s11 }
  0x52   : > { %1482 = vmatprep.subr.bf16.mxu0 %v1817_v2  ;;  %1490 = vmatprep.subr.bf16.mxu1 %v1817_v2  ;;  %v2040_v4 = vld [vmem:[%s2031_s30] sm:$0xff]  ;;  %v2054_v9 = vld [vmem:[%s416_s0] sm:$0xff]  ;;  %s1820_s24 = smov 120   ;;  %s1821_s25 = smov 112   ;;  %vm509_vm3 = vcmask 64512   ;;  %vm769_vm4 = vcmask 1043456  }
  0x53   : > { %1483 = vmatpush3.bf16.msra.mxu0 %v1654_v1  ;;  %1486 = vmatprep.mubr.msk.bf16.mxu0 %vm1818_vm1, %v1817_v2  ;;  %v427_v5 = vpack.c.bf16 %v2040_v4, %v2040_v4  ;;  %v2051_v7 = vshrl.u32 %v432_v6, 7  ;;  %s1822_s26 = smov 96   ;;  %v703_v31 = vld [vmem:[%s2272_s8] sm:$0x1]  ;;  %s1823_s14 = smov 64   ;;  %vm970_vm5 = vcmask 130048  }
  0x54   : > { %1484 = vmatprep.subr.bf16.mxu0 %v1817_v2  ;;  %1492 = vmatprep.mubr.msk.bf16.mxu1 %vm1818_vm1, %v1817_v2  ;;  %v704_v32 = vsub.f32 1.0, %v703_v31  ;;  %s1824_s19 = smov 8   ;;  %s1825_s11 = smov 16   ;;  %vm972_vm6 = vcmask 195584   ;;  %vm1170_vm7 = vcmask 523264  }
  0x55   : > { %v434_v8 = vsub.s32 0, %v2051_v7  ;;  %s1826_s10 = smov 24   ;;  %s2273_s23 = sld [smem:[#allocation19_spill]] }
  0x56   : > { %v705_v33 = vmul.f32 10000.0, %v704_v32  ;;  %s1240_s9 = scalar_lea.sflag [#allocation4], %s1992_s22  ;;  %p2274_p7 = scmp.ne.s32.totalorder %s2264_s16, 0 }
  0x57   : > { %1485 = vmatpush3.bf16.msra.mxu0 %v1655_v3  ;;  %v435_v10 = vrot.slane %v2054_v9, %v434_v8 }
  0x58   : > { %1496 = vmatprep.subr.bf16.mxu0 %v1817_v2  ;;  %v710_v34 = vrot.slane %v705_v33, %v434_v8 }
  0x5a   : > { %1487 = vmatmul.mubr.msk.bf16.vlgmr.msra.gmra.mrb[0].mxu0 %vm448_vm2, %v427_v5 }
  0x5b   : > { %1498 = vmatprep.mubr.msk.bf16.mxu0 %vm1818_vm1, %v1817_v2 }
 0x12d   : > { %v486_v11 = vpop.f32.mrb[0].mxu0 }
 0x12e   : > { %v487_v12 = vadd.f32 %v486_v11, %v435_v10  ;;  %v1488_v13 = vpop.f32.mrb[1].mxu0 }
 0x12f   : > { %v489_v14 = vpop.f32.mrb[2].mxu0 }
 0x130   : > { %499 = vrot.lane.b32.xlu1 %v487_v12, %s1819_s7  ;;  %493 = vrot.lane.b32.xlu0 %v487_v12, %s1820_s24  ;;  %v1489_v15 = vpop.f32.mrb[3].mxu0  ;;  %v2057_v16 = vpack.c.bf16 %v487_v12, %v487_v12 }
 0x134   : > { %496 = vrot.lane.b32.xlu0 %v487_v12, %s1821_s25  ;;  %507 = vrot.lane.b32.xlu1 %v2057_v16, %s1822_s26 }
 0x1a2   : > { %v500_v17 = vpop.permute.xlu1 %499  ;;  %v494_v18 = vpop.permute.xlu0 %493 }
 0x1a3   : > { %v2060_v19 = vpack.c.bf16 %v494_v18, %v494_v18  ;;  %v2063_v22 = vpack.c.bf16 %v500_v17, %v500_v17 }
 0x1a5   : > { %557 = vrot.lane.b32.xlu0 %v2060_v19, %s1822_s26 }
 0x1a6   : > { %v497_v20 = vpop.permute.xlu0 %496  ;;  %v508_v21 = vpop.permute.xlu1 %507 }
 0x1a7   : > { %v2065_v23 = vpack.c.bf16 %v497_v20, %v497_v20  ;;  %v514_v24 = vsel %vm509_vm3, %v508_v21, 0 }
 0x1a8   : > { %1491 = vmatpush3.bf16.xpose.msra.mxu1 %v514_v24 }
 0x1a9   : > { %655 = vrot.lane.b32.xlu0 %v2063_v22, %s1822_s26  ;;  %606 = vrot.lane.b32.xlu1 %v2065_v23, %s1822_s26 }
 0x1aa   : > { %1502 = vmatprep.subr.bf16.mxu1 %v1817_v2 }
 0x1af   : > { %1493 = vmatmul.mubr.msk.bf16.vlgmr.msra.gmra.mrb[0].mxu1 %vm509_vm3, %v2057_v16 }
 0x1b0   : > { %1504 = vmatprep.mubr.msk.bf16.mxu1 %vm1818_vm1, %v1817_v2 }
 0x217   : > { %v558_v25 = vpop.permute.xlu0 %557 }
 0x218   : > { %v563_v26 = vsel %vm509_vm3, %v558_v25, 0 }
 0x219   : > { %1497 = vmatpush3.bf16.xpose.msra.mxu0 %v563_v26 }
 0x21a   : > { %1508 = vmatprep.subr.bf16.mxu0 %v1817_v2 }
 0x21b   : > { %v607_v27 = vpop.permute.xlu1 %606  ;;  %v656_v29 = vpop.permute.xlu0 %655 }
 0x21c   : > { %v612_v28 = vsel %vm509_vm3, %v607_v27, 0  ;;  %v661_v30 = vsel %vm509_vm3, %v656_v29, 0 }
 0x21d   : > { %1503 = vmatpush3.bf16.xpose.msra.mxu1 %v612_v28 }
 0x21e   : > { %1514 = vmatprep.subr.bf16.mxu1 %v1817_v2 }
 0x220   : > { %1499 = vmatmul.mubr.msk.bf16.vlgmr.msra.gmra.mrb[4].mxu0 %vm509_vm3, %v2060_v19 }
 0x221   : > { %1509 = vmatpush3.bf16.xpose.msra.mxu0 %v661_v30  ;;  %1510 = vmatprep.mubr.msk.bf16.mxu0 %vm1818_vm1, %v1817_v2 }
 0x222   : > { %1520 = vmatprep.subr.bf16.mxu0 %v1817_v2 }
 0x224   : > { %1505 = vmatmul.mubr.msk.bf16.vlgmr.msra.gmra.mrb[4].mxu1 %vm509_vm3, %v2065_v23 }
 0x225   : > { %1516 = vmatprep.mubr.msk.bf16.mxu1 %vm1818_vm1, %v1817_v2 }
 0x228   : > { %1511 = vmatmul.mubr.msk.bf16.vlgmr.msra.gmra.mrb[8].mxu0 %vm509_vm3, %v2063_v22 }
 0x229   : > { %1522 = vmatprep.mubr.msk.bf16.mxu0 %vm1818_vm1, %v1817_v2 }
 0x282   : > { %v550_v35 = vpop.f32.mrb[0].mxu1 }
 0x283   : > { %v712_v36 = vsub.f32 %v550_v35, %v710_v34  ;;  %v1494_v37 = vpop.f32.mrb[1].mxu1 }
 0x284   : > { %v553_v38 = vpop.f32.mrb[2].mxu1 }
 0x285   : > { %v1495_v39 = vpop.f32.mrb[3].mxu1  ;;  %v716_v40 = vsel %vm509_vm3, %v712_v36, -inf }
 0x286   : > { %717 = vmax.xlane.f32.xlu1 %v716_v40 }
 0x2f3   : > { %v599_v41 = vpop.f32.mrb[4].mxu0 }
 0x2f4   : > { %v713_v42 = vsub.f32 %v599_v41, %v710_v34  ;;  %v1500_v43 = vpop.f32.mrb[5].mxu0 }
 0x2f5   : > { %v602_v44 = vpop.f32.mrb[6].mxu0 }
 0x2f6   : > { %v1501_v45 = vpop.f32.mrb[7].mxu0  ;;  %v719_v46 = vsel %vm509_vm3, %v713_v42, -inf }
 0x2f7   : > { %v648_v47 = vpop.f32.mrb[4].mxu1  ;;  %720 = vmax.xlane.f32.xlu0 %v719_v46 }
 0x2f8   : > { %v714_v48 = vsub.f32 %v648_v47, %v710_v34  ;;  %v1506_v49 = vpop.f32.mrb[5].mxu1  ;;  %v1656_v47 = vld [vmem:[%s2016_s20] sm:$0xff]  }
 0x2f9   : > { %v651_v50 = vpop.f32.mrb[6].mxu1 }
 0x2fa   : > { %v1507_v51 = vpop.f32.mrb[7].mxu1  ;;  %v722_v52 = vsel %vm509_vm3, %v714_v48, -inf }
 0x2fb   : > { %723 = vmax.xlane.f32.xlu0 %v722_v52  ;;  %v697_v53 = vpop.f32.mrb[8].mxu0 }
 0x2fc   : > { %v715_v54 = vsub.f32 %v697_v53, %v710_v34  ;;  %v1512_v55 = vpop.f32.mrb[9].mxu0 }
 0x2fd   : > { %v700_v56 = vpop.f32.mrb[10].mxu0 }
 0x2fe   : > { %v1513_v57 = vpop.f32.mrb[11].mxu0  ;;  %v725_v58 = vsel %vm509_vm3, %v715_v54, -inf }
 0x2ff   : > { %726 = vmax.xlane.f32.xlu1 %v725_v58 }
 0x310   : > { %813 = vrot.lane.b32.xlu1 %v2060_v19, %s1823_s14 }
 0x311   : > { %764 = vrot.lane.b32.xlu0 %v2057_v16, %s1823_s14 }
 0x313   : > { %v718_v59 = vpop.xlane.xlu1 %717 }
 0x314   : > { %v728_v60 = vsub.f32 %v712_v36, %v718_v59 }
 0x316   : > { %v732_v61 = vmul.f32 1.442695, %v728_v60 }
 0x318   : > { %1664 = vpow2.f32 %v732_v61 }
 0x322   : > { %v1665_v62 = vpop.eup %1664 }
 0x323   : > { %v740_v63 = vsel %vm509_vm3, %v1665_v62, 0.0 }
 0x330   : > { %741 = vadd.xlane.f32.xlu0 %v740_v63 }
 0x384   : > { %v721_v0 = vpop.xlane.xlu0 %720 }
 0x385   : > { %v729_v1 = vsub.f32 %v713_v42, %v721_v0 }
 0x387   : > { %v734_v3 = vmul.f32 1.442695, %v729_v1 }
 0x388   : > { %v724_v5 = vpop.xlane.xlu0 %723 }
 0x389   : > { %1666 = vpow2.f32 %v734_v3  ;;  %v730_v6 = vsub.f32 %v714_v48, %v724_v5  ;;  %v1657_v48 = vld [vmem:[%s2016_s20 + $0x8] sm:$0xff]   ;;  %s1253_s20 = sshll.u32 %s2031_s30, 4  ;;  %s2179_s20 = int_to_ptr.vmem [resolvable:$true] %s1253_s20 }
 0x38b   : > { %v736_v8 = vmul.f32 1.442695, %v730_v6  ;;  %v981_v6 = vsub.s32 2, %v2051_v7 }
 0x38c   : > { %v765_v10 = vpop.permute.xlu0 %764  ;;  %v727_v11 = vpop.xlane.xlu1 %726 }
 0x38d   : > { %1668 = vpow2.f32 %v736_v8  ;;  %v771_v12 = vsel %vm769_vm4, %v765_v10, 0  ;;  %v731_v13 = vsub.f32 %v715_v54, %v727_v11  ;;  %v982_v8 = vrot.slane %v2054_v9, %v981_v6 }
 0x38e   : > { %1515 = vmatpush3.bf16.msra.mxu1 %v771_v12  ;;  %v1230_v6 = vsub.s32 6, %v2051_v7 }
 0x38f   : > { %v738_v14 = vmul.f32 1.442695, %v731_v13  ;;  %1526 = vmatprep.subr.bf16.mxu1 %v1817_v2 }
 0x390   : > { %v814_v15 = vpop.permute.xlu1 %813 }
 0x391   : > { %1670 = vpow2.f32 %v738_v14  ;;  %v819_v16 = vsel %vm769_vm4, %v814_v15, 0 }
 0x392   : > { %1521 = vmatpush3.bf16.msra.mxu0 %v819_v16 }
 0x393   : > { %v1667_v17 = vpop.eup %1666  ;;  %1532 = vmatprep.subr.bf16.mxu0 %v1817_v2 }
 0x394   : > { %v743_v18 = vsel %vm509_vm3, %v1667_v17, 0.0 }
 0x395   : > { %744 = vadd.xlane.f32.xlu1 %v743_v18 }
 0x397   : > { %v1669_v19 = vpop.eup %1668 }
 0x398   : > { %v746_v20 = vsel %vm509_vm3, %v1669_v19, 0.0 }
 0x399   : > { %747 = vadd.xlane.f32.xlu0 %v746_v20 }
 0x39b   : > { %v1671_v21 = vpop.eup %1670 }
 0x39c   : > { %v749_v24 = vsel %vm509_vm3, %v1671_v21, 0.0 }
 0x39d   : > { %750 = vadd.xlane.f32.xlu1 %v749_v24  ;;  %v1658_v24 = vld [vmem:[%s2021_s18] sm:$0xff]  }
 0x3ae   : > { %861 = vrot.lane.b32.xlu1 %v2065_v23, %s1823_s14 }
 0x3af   : > { %909 = vrot.lane.b32.xlu0 %v2063_v22, %s1823_s14 }
 0x3bd   : > { %v742_v25 = vpop.xlane.xlu0 %741 }
 0x3be   : > { %1672 = vrcp.f32 %v742_v25  ;;  %v1659_v25 = vld [vmem:[%s2021_s18 + $0x8] sm:$0xff]   ;;  %s1445_s18 = sshll.u32 %s1802_s28, 7  ;;  %s1827_s28 = smov [#allocation5]  }
 0x3bf   : > { %s2177_s15 = scalar_lea.hbm %s2273_s23, %s1445_s18  ;;  %s1720_s13 = sshll.u32 %s1827_s28, 4  ;;  %s1721_s13 = int_to_ptr.vmem [resolvable:$false] %s1720_s13 }
 0x3c0   : > { %s1722_s0 = scalar_lea.vmem %s1721_s13, 256  ;;  %p1723_p6 = scmp.lt.s32.totalorder %s2179_s20, %s1721_s13 }
 0x3c8   : > { %v1673_v26 = vpop.eup %1672 }
 0x3c9   : > { %v756_v27 = vmul.f32 %v1673_v26, %v1665_v62 }
 0x3cb   : > { %v760_v28 = vpack.c.bf16 %v756_v27, %v756_v27 }
 0x3cd   : > { %1517 = vmatmul.mubr.msk.bf16.vlgmr.msra.gmra.mrb[8].mxu1 %vm509_vm3, %v760_v28  ;;  %v1055_v28 = vsub.s32 3, %v2051_v7 }
 0x3ce   : > { %1528 = vmatprep.mubr.msk.bf16.mxu1 %vm1818_vm1, %v1817_v2 }
 0x422   : > { %v745_v29 = vpop.xlane.xlu1 %744 }
 0x423   : > { %1674 = vrcp.f32 %v745_v29  ;;  %v1060_v29 = vsub.s32 4, %v2051_v7 }
 0x426   : > { %v748_v30 = vpop.xlane.xlu0 %747 }
 0x427   : > { %1676 = vrcp.f32 %v748_v30  ;;  %v1056_v30 = vrot.slane %v2054_v9, %v1055_v28 }
 0x42a   : > { %v751_v31 = vpop.xlane.xlu1 %750  ;;  %v910_v22 = vpop.permute.xlu0 %909 }
 0x42b   : > { %1678 = vrcp.f32 %v751_v31  ;;  %v915_v38 = vsel %vm769_vm4, %v910_v22, 0 }
 0x42d   : > { %v1675_v23 = vpop.eup %1674 }
 0x42e   : > { %v757_v32 = vmul.f32 %v1675_v23, %v1667_v17  ;;  %v862_v33 = vpop.permute.xlu1 %861 }
 0x42f   : > { %v867_v34 = vsel %vm769_vm4, %v862_v33, 0 }
 0x430   : > { %1527 = vmatpush3.bf16.msra.mxu1 %v867_v34  ;;  %v761_v35 = vpack.c.bf16 %v757_v32, %v757_v32  ;;  %v1061_v32 = vrot.slane %v2054_v9, %v1060_v29 }
 0x431   : > { %v1677_v36 = vpop.eup %1676  ;;  %1538 = vmatprep.subr.bf16.mxu1 %v1817_v2 }
 0x432   : > { %v758_v37 = vmul.f32 %v1677_v36, %v1669_v19  ;;  %1523 = vmatmul.mubr.msk.bf16.vlgmr.msra.gmra.mrb[12].mxu0 %vm509_vm3, %v761_v35  ;;  %v1660_v35 = vld [vmem:[%s2026_s17] sm:$0xff]   ;;  %v1661_v36 = vld [vmem:[%s2026_s17 + $0x8] sm:$0xff]  }
 0x433   : > { %1533 = vmatpush3.bf16.msra.mxu0 %v915_v38  ;;  %1534 = vmatprep.mubr.msk.bf16.mxu0 %vm1818_vm1, %v1817_v2  ;;  %v1663_v38 = vld [vmem:[%s2026_s17 + $0x18] sm:$0xff]  }
 0x434   : > { %v762_v39 = vpack.c.bf16 %v758_v37, %v758_v37  ;;  %1546 = vmatprep.subr.bf16.mxu0 %v1817_v2  ;;  %v1662_v37 = vld [vmem:[%s2026_s17 + $0x10] sm:$0xff]   ;;  %s1716_s17 = scalar_lea.vmem %s2179_s20, 128 }
 0x435   : > { %v1679_v40 = vpop.eup %1678  ;;  %p1717_p0 = scmp.ne.s32.totalorder %s2179_s20, %s1716_s17  ;;  %p1724_p3 = scmp.lt.s32.totalorder %s1722_s0, %s1716_s17 }
 0x436   : > { %v759_v41 = vmul.f32 %v1679_v40, %v1671_v21  ;;  %1529 = vmatmul.mubr.msk.bf16.vlgmr.msra.gmra.mrb[12].mxu1 %vm509_vm3, %v762_v39  ;;  %v1070_v39 = vsub.s32 1, %v2051_v7 }
 0x437   : > { %1542 = vmatprep.mubr.msk.bf16.mxu1 %vm1818_vm1, %v1817_v2  ;;  %1539 = vmatpush3.bf16.msra.mxu1 %v1656_v47  ;;  %p1718_p13 = pnand %p1717_p0, %p2274_p7  ;;  %p1725_p8 = por %p1724_p3, %p1723_p6 }
 0x438   : > { %v763_v42 = vpack.c.bf16 %v759_v41, %v759_v41  ;;  %1540 = vmatprep.subr.bf16.mxu1 %v1817_v2  ;;  %v1071_v40 = vrot.slane %v2054_v9, %v1070_v39 }
 0x439   : > { %p1719_p4 = pneg %p1718_p13 }
 0x43a   : > { %1535 = vmatmul.mubr.msk.bf16.vlgmr.msra.gmra.mrb[16].mxu0 %vm509_vm3, %v763_v42 }
 0x43b   : > { %1550 = vmatprep.mubr.msk.bf16.mxu0 %vm1818_vm1, %v1817_v2  ;;  %1541 = vmatpush3.bf16.msra.mxu1 %v1657_v48  ;;  %p1726_p12 = pnand %p1725_p8, %p1719_p4 }
 0x43c   : > { %1554 = vmatprep.subr.bf16.mxu1 %v1817_v2  ;;  %1547 = vmatpush3.bf16.msra.mxu0 %v1658_v24 }
 0x43d   : > { %1548 = vmatprep.subr.bf16.mxu0 %v1817_v2 }
 0x440   : > { %1549 = vmatpush3.bf16.msra.mxu0 %v1659_v25 }
 0x4a0   : > { %v807_v43 = vpop.f32.mrb[8].mxu1 }
 0x4a1   : > { %v1518_v44 = vpop.f32.mrb[9].mxu1 }
 0x4a2   : > { %v810_v45 = vpop.f32.mrb[10].mxu1 }
 0x4a3   : > { %v1519_v46 = vpop.f32.mrb[11].mxu1 }
 0x505   : > { %v855_v49 = vpop.f32.mrb[12].mxu0 }
 0x506   : > { %958 = vrot.lane.b32.xlu1 %v855_v49, %s1824_s19  ;;  %v1524_v50 = vpop.f32.mrb[13].mxu0 }
 0x507   : > { %v858_v51 = vpop.f32.mrb[14].mxu0 }
 0x508   : > { %v1525_v52 = vpop.f32.mrb[15].mxu0 }
 0x509   : > { %v903_v53 = vpop.f32.mrb[12].mxu1 }
 0x50a   : > { %962 = vrot.lane.b32.xlu0 %v903_v53, %s1825_s11  ;;  %v1530_v54 = vpop.f32.mrb[13].mxu1 }
 0x50b   : > { %v906_v55 = vpop.f32.mrb[14].mxu1 }
 0x50c   : > { %v1531_v56 = vpop.f32.mrb[15].mxu1 }
 0x50d   : > { %v951_v57 = vpop.f32.mrb[16].mxu0 }
 0x50e   : > { %966 = vrot.lane.b32.xlu1 %v951_v57, %s1826_s10  ;;  %v1536_v58 = vpop.f32.mrb[17].mxu0 }
 0x50f   : > { %v954_v59 = vpop.f32.mrb[18].mxu0 }
 0x510   : > { %v1537_v60 = vpop.f32.mrb[19].mxu0 }
 0x578   : > { %v959_v61 = vpop.permute.xlu1 %958 }
 0x579   : > { %v969_v63 = vsel %vm509_vm3, %v807_v43, %v959_v61 }
 0x57c   : > { %v963_v62 = vpop.permute.xlu0 %962 }
 0x57d   : > { %v971_v0 = vsel %vm970_vm5, %v969_v63, %v963_v62 }
 0x580   : > { %v967_v1 = vpop.permute.xlu1 %966 }
 0x581   : > { %v973_v3 = vsel %vm972_vm6, %v971_v0, %v967_v1 }
 0x582   : > { %v974_v5 = vpack.c.bf16 %v973_v3, %v973_v3 }
 0x584   : > { %1543 = vmatmul.mubr.msk.bf16.vlgmr.msra.gmra.mrb[16].mxu1 %vm448_vm2, %v974_v5 }
 0x585   : > { %1562 = vmatprep.mubr.msk.bf16.mxu1 %vm1818_vm1, %v1817_v2  ;;  %1555 = vmatpush3.bf16.msra.mxu1 %v1660_v35 }
 0x586   : > { %1556 = vmatprep.subr.bf16.mxu1 %v1817_v2 }
 0x589   : > { %1557 = vmatpush3.bf16.msra.mxu1 %v1661_v36 }
 0x58a   : > { %1558 = vmatprep.subr.bf16.mxu1 %v1817_v2 }
 0x58d   : > { %1559 = vmatpush3.bf16.msra.mxu1 %v1662_v37 }
 0x58e   : > { %1560 = vmatprep.subr.bf16.mxu1 %v1817_v2  ;;  %v1144_v2 = vsub.s32 5, %v2051_v7 }
 0x590   : > { %v1145_v52 = vrot.slane %v2054_v9, %v1144_v2 }
 0x591   : > { %1561 = vmatpush3.bf16.msra.mxu1 %v1663_v38 }
 0x657   : > { %v1032_v10 = vpop.f32.mrb[16].mxu1 }
 0x658   : > { %v1033_v11 = vadd.f32 %v1032_v10, %v982_v8  ;;  %v1544_v12 = vpop.f32.mrb[17].mxu1  ;;  %v1235_v8 = vsub.s32 7, %v2051_v7  ;;  %v1231_v10 = vrot.slane %v2054_v9, %v1230_v6 }
 0x659   : > { %v1035_v13 = vpop.f32.mrb[18].mxu1 }
 0x65a   : > { %v1545_v14 = vpop.f32.mrb[19].mxu1  ;;  %v1038_v15 = vadd.f32 %v1033_v11, %v2040_v4  ;;  %v1236_v13 = vrot.slane %v2054_v9, %v1235_v8 }
 0x65c   : > { %v1039_v16 = vsel %vm448_vm2, %v1038_v15, 0.0 }
 0x65d   : > { %1040 = vadd.xlane.f32.xlu0 %v1039_v16 }
 0x6ea   : > { %v1041_v17 = vpop.xlane.xlu0 %1040 }
 0x6eb   : > { %v1043_v18 = vmul.f32 0.03125, %v1041_v17 }
 0x6ed   : > { %v1044_v19 = vsub.f32 %v1038_v15, %v1043_v18 }
 0x6ef   : > { %v1045_v20 = vmul.f32 %v1044_v19, %v1044_v19 }
 0x6f1   : > { %v1046_v21 = vsel %vm448_vm2, %v1045_v20, 0.0 }
 0x6f2   : > { %1047 = vadd.xlane.f32.xlu1 %v1046_v21 }
 0x77f   : > { %v1048_v26 = vpop.xlane.xlu1 %1047 }
 0x780   : > { %v1049_v27 = vmul.f32 0.03125, %v1048_v26 }
 0x782   : > { %v1050_v4 = vadd.f32 1e-12, %v1049_v27 }
 0x784   : > { %1680 = vrsqrt.f32 %v1050_v4 }
 0x78e   : > { %v1681_v31 = vpop.eup %1680 }
 0x78f   : > { %v1052_v23 = vmul.f32 %v1681_v31, %v1044_v19 }
 0x791   : > { %v1057_v33 = vmul.f32 %v1056_v30, %v1052_v23 }
 0x793   : > { %v1062_v22 = vadd.f32 %v1061_v32, %v1057_v33 }
 0x795   : > { %v1063_v34 = vpack.c.bf16 %v1062_v22, %v1062_v22 }
 0x797   : > { %1551 = vmatmul.mubr.msk.bf16.vlgmr.msra.gmra.mrb[20].mxu0 %vm448_vm2, %v1063_v34 }
 0x86a   : > { %v1121_v41 = vpop.f32.mrb[20].mxu0 }
 0x86b   : > { %v1122_v42 = vadd.f32 %v1121_v41, %v1071_v40  ;;  %v1552_v43 = vpop.f32.mrb[21].mxu0 }
 0x86c   : > { %v1124_v44 = vpop.f32.mrb[22].mxu0 }
 0x86d   : > { %v1129_v45 = vmul.f32 0.70710677, %v1122_v42  ;;  %v1553_v46 = vpop.f32.mrb[23].mxu0  ;;  %v1127_v48 = vmul.f32 0.5, %v1122_v42 }
 0x86f   : > { %1682 = verf.f32 %v1129_v45 }
 0x879   : > { %v1683_v47 = vpop.eup %1682 }
 0x87a   : > { %v1131_v49 = vadd.f32 1.0, %v1683_v47 }
 0x87c   : > { %v1132_v50 = vmul.f32 %v1131_v49, %v1127_v48 }
 0x87e   : > { %v1133_v51 = vpack.c.bf16 %v1132_v50, %v1132_v50 }
 0x880   : > { %1563 = vmatmul.mubr.msk.bf16.vlgmr.msra.gmra.mrb[20].mxu1 %vm1170_vm7, %v1133_v51 }
 0x953   : > { %v1208_v53 = vpop.f32.mrb[20].mxu1 }
 0x954   : > { %v1209_v54 = vadd.f32 %v1208_v53, %v1145_v52  ;;  %v1564_v55 = vpop.f32.mrb[21].mxu1 }
 0x955   : > { %v1211_v56 = vpop.f32.mrb[22].mxu1 }
 0x956   : > { %v1565_v57 = vpop.f32.mrb[23].mxu1  ;;  %v1214_v58 = vadd.f32 %v1209_v54, %v1062_v22 }
 0x958   : > { %v1215_v59 = vsel %vm448_vm2, %v1214_v58, 0.0 }
 0x959   : > { %1216 = vadd.xlane.f32.xlu0 %v1215_v59 }
 0x9e6   : > { %v1217_v60 = vpop.xlane.xlu0 %1216 }
 0x9e7   : > { %v1218_v61 = vmul.f32 0.03125, %v1217_v60 }
 0x9e9   : > { %v1219_v62 = vsub.f32 %v1214_v58, %v1218_v61 }
 0x9eb   : > { %v1220_v63 = vmul.f32 %v1219_v62, %v1219_v62 }
 0x9ed   : > { %v1221_v0 = vsel %vm448_vm2, %v1220_v63, 0.0 }
 0x9ee   : > { %1222 = vadd.xlane.f32.xlu0 %v1221_v0 }
 0xa7b   : > { %v1223_v1 = vpop.xlane.xlu0 %1222 }
 0xa7c   : > { %v1224_v3 = vmul.f32 0.03125, %v1223_v1 }
 0xa7e   : > { %v1225_v5 = vadd.f32 1e-12, %v1224_v3 }
 0xa80   : > { %1684 = vrsqrt.f32 %v1225_v5 }
 0xa8a   : > { %v1685_v11 = vpop.eup %1684 }
 0xa8b   : > { %v1227_v12 = vmul.f32 %v1685_v11, %v1219_v62 }
 0xa8d   : > { %v1232_v14 = vmul.f32 %v1231_v10, %v1227_v12 }
 0xa8f   : > { %v1237_v15 = vadd.f32 %v1236_v13, %v1232_v14 }
 0xa91   : > { %1238 = vst.msk [vmem:[%s2031_s30] sm:$0xff] %vm448_vm2, %v1237_v15 }
 0xa92   : > { %1729 = shalt.err (!%p1726_p12)
}
 0xa93   : > { %s1730_s22 = scalar_lea.hbm %s2177_s15, 128  ;;  %s1734_s24 = scalar_lea.hbm %s2273_s23, 256 }
 0xa94   : > { %p1731_p1 = scmp.ne.s32.totalorder %s2177_s15, %s1730_s22  ;;  %p1735_p10 = scmp.lt.u32.totalorder %s2177_s15, %s2273_s23 }
 0xa95   : > { %p1736_p11 = scmp.lt.u32.totalorder %s1734_s24, %s1730_s22  ;;  %p1738_p0 = scmp.lt.u32.totalorder %s1730_s22, %s2177_s15 }
 0xa96   : > { %p1732_p2 = pnand %p1731_p1, %p2274_p7 }
 0xa97   : > { %p1737_p9 = por %p1736_p11, %p1735_p10 }
 0xa98   : > { %p1733_p5 = pneg %p1732_p2 }
 0xa99   : > { %p1739_p13 = por %p1738_p0, %p1737_p9 }
 0xa9b   : > { %p1740_p4 = pnand %p1739_p13, %p1733_p5 }
 0xa9d   : > { %1743 = shalt.err (!%p1740_p4)
}
 0xa9e   : > { %1568 = dma.vmem_to_hbm [thread:$0]  (%p2274_p7), %s2179_s20, 128, %s2177_s15, %s1240_s9  }
 0xa9f PF: > { %s2275_s27 = sld [smem:[#allocation13_spill]]  ;;  %s2276_s29 = sld [smem:[#allocation8_spill]] }
 0xaa0   : > { %s2277_s8 = sld [smem:[#allocation16_spill]] }
 0xaa5   : > { %p1579_p6 = scmp.ge.s32.totalorder %s2275_s27, 2  ;;  %s1265_s14 = sand.u32 1, %s2276_s29  }
 0xaa6   : > { %p2278_p3 = scmp.ne.s32.totalorder %s2277_s8, 0  ;;  %s1266_s19 = scalar_lea.sflag [#allocation4], %s1265_s14 }
 0xaa8   : > { %p1575_p8 = pnand %p1579_p6, %p2278_p3 }
 0xaaa   : > { %1781 = dma.done.wait (!%p1575_p8), %s1266_s19, 128  }
 0xaab   : > { %1783 = vsyncadd (!%p1575_p8), %s1266_s19, 4294967168  ;;  %s23_s8 = sadd.s32 1, %s2275_s27   ;;  %s2279_s24 = sld [smem:[#allocation9_spill]] }
 0xaac   : > { %p20_p12 = scmp.ge.s32.totalorder %s23_s8, 6   ;;  %s2280_s25 = sld [smem:[#allocation10_spill]] }
 0xaad   : > { %s2281_s26 = sld [smem:[#allocation17_spill]]  ;;  %s2282_s27 = sld [smem:[#allocation11_spill]] }
 0xaae   : > { %s2283_s28 = sld [smem:[#allocation12_spill]]  ;;  %s2284_s29 = sld [smem:[#allocation14_spill]] }
 0xaaf   : > { %s2285_s30 = sld [smem:[#allocation15_spill]]  ;;  %22 = sbr.rel (!%p20_p12) target bundleno = 10 (0xa), region = 115 }
 0xab6   :  { %1271 = vsyncpa [#allocation3], 1 }
 0xab7   :  { %1273 = vsyncpa [#allocation3 + $0x1], 1 }
 0xab8   :  { %1274 = vsyncpa [#allocation4], 1 }
 0xab9   :  { %1276 = vsyncpa [#allocation4 + $0x1], 1 }

</bundles_post_ra>
